<compile_context>
chip_gen: v6e
topology: v6e:2x2x1
jax: 0.10.0
libtpu: 0.0.40
codegen_flags: <defaults>
</compile_context>

<pallas_src>
import jax
import jax.numpy as jnp
from jax.experimental import pallas as pl
from jax.experimental.pallas import tpu as pltpu

ALPHA = 0.8
GAMMA = 2          # integer: (1 - pt)**GAMMA lowers to GAMMA-1 vmuls
LANES = 128


def _cdiv(a, b):
    return -(-a // b)


def _round_up(a, m):
    return _cdiv(a, m) * m


def _tpu_defaults():
    """(tensorcores_per_device, max_row_tile, vmem_limit_bytes).

    Conservative string-based chip detection; anything unrecognized gets the
    safe single-TensorCore v5e/v6e configuration.
    """
    kind = ""
    try:
        kind = jax.devices()[0].device_kind.lower()
    except Exception:
        pass
    if "v7" in kind or "7x" in kind:
        # v7x: 2 TensorCores, 64 MiB VMEM, 3.2 TB/s HBM -> bigger tiles to
        # amortize the ~0.35 us/step cost, plus a real 2-way core split.
        return 2, 8192, 48 * 1024 * 1024
    # v5e / v6e: single TensorCore; 4096-row tiles already sit at the roofline.
    return 1, 4096, 32 * 1024 * 1024


def focal_loss(inputs, targets, *, max_row_tile=None, num_shards=None):
    """Mean focal loss over all elements (FocalLoss(0.8, 2, logits=False))."""
    assert inputs.shape == targets.shape
    total_n = int(inputs.size)
    assert total_n > 0

    cores, default_tile, vmem_limit = _tpu_defaults()
    if max_row_tile is None:
        max_row_tile = default_tile

    flat_x = inputs.reshape(-1)
    flat_t = targets.reshape(-1)

    rows = _cdiv(total_n, LANES)

    # Lane-ragged sizes need one pad so the (rows, 128) reshape is exact; the
    # pad VALUE is irrelevant (masked in-kernel by global element index).
    lane_pad = rows * LANES - total_n
    if lane_pad:
        flat_x = jnp.pad(flat_x, (0, lane_pad))
        flat_t = jnp.pad(flat_t, (0, lane_pad))

    x2d = flat_x.reshape(rows, LANES)
    t2d = flat_t.reshape(rows, LANES)

    # Shard across TensorCores only when the chip really has more than one and
    # there is enough work to amortize the split (v5e/v6e always get 1 shard).
    if num_shards is None:
        num_shards = cores if (cores > 1 and rows >= 256 * cores) else 1

    rows_per_shard = _cdiv(rows, num_shards)
    row_tile = min(max_row_tile, _round_up(rows_per_shard, 32))
    row_tile = max(8, _round_up(row_tile, 8))   # for the in-kernel (_,8,128) reshape
    tiles_per_shard = _cdiv(rows_per_shard, row_tile)

    # Trace-time specialization: skip the mask entirely when the grid covers
    # exactly total_n elements (no lane pad, no row remainder).
    covered = num_shards * tiles_per_shard * row_tile * LANES
    needs_mask = covered != total_n

    def kernel(x_ref, t_ref, o_ref):
        i = pl.program_id(1)

        @pl.when(i == 0)
        def _init():
            o_ref[...] = jnp.zeros_like(o_ref)

        p = x_ref[...].astype(jnp.float32)
        t = t_ref[...].astype(jnp.float32)

        # binary_cross_entropy on probabilities; PyTorch clamps log() at -100.
        log_p = jnp.maximum(jnp.log(p), -100.0)
        log_1mp = jnp.maximum(jnp.log(1.0 - p), -100.0)
        bce = -(t * log_p + (1.0 - t) * log_1mp)

        # Focal weighting: pt = exp(-BCE); (1 - pt)**GAMMA by repeated multiply.
        if GAMMA == 0:
            focal = bce
        else:
            one_m_pt = 1.0 - jnp.exp(-bce)
            w = one_m_pt
            for _ in range(int(GAMMA) - 1):
                w = w * one_m_pt
            focal = w * bce

        if needs_mask:
            # Zero contributions from rows past the end of the array (the grid
            # over-covers the last tile) and from lane-pad elements.  Pure VPU
            # work; the kernel is EUP/HBM-bound, so this is free filler.
            base_row = (pl.program_id(0) * tiles_per_shard + i) * row_tile
            row_ids = jax.lax.broadcasted_iota(jnp.int32, (row_tile, LANES), 0)
            col_ids = jax.lax.broadcasted_iota(jnp.int32, (row_tile, LANES), 1)
            elem_ids = (base_row + row_ids) * LANES + col_ids
            focal = jnp.where(elem_ids < total_n, focal, 0.0)

        # Tree-reduce the tile to one vreg-sized block and accumulate into the
        # resident output block (alpha and 1/N are applied in the wrapper).
        o_ref[...] += focal.reshape(row_tile // 8, 8, LANES).sum(axis=0)

    if num_shards > 1:
        dims = (pltpu.CORE_PARALLEL, pltpu.ARBITRARY)   # real 2-TC split on v7x
    else:
        dims = ("arbitrary", "arbitrary")

    cost = pl.CostEstimate(
        flops=14 * total_n,
        transcendentals=3 * total_n,
        bytes_accessed=(x2d.dtype.itemsize + t2d.dtype.itemsize) * rows * LANES
        + num_shards * 8 * LANES * 4,
    )

    partial = pl.pallas_call(
        kernel,
        out_shape=jax.ShapeDtypeStruct((num_shards * 8, LANES), jnp.float32),
        grid_spec=pltpu.PrefetchScalarGridSpec(
            num_scalar_prefetch=0,
            grid=(num_shards, tiles_per_shard),
            in_specs=[
                pl.BlockSpec((row_tile, LANES),
                             lambda c, i: (c * tiles_per_shard + i, 0)),
                pl.BlockSpec((row_tile, LANES),
                             lambda c, i: (c * tiles_per_shard + i, 0)),
            ],
            out_specs=pl.BlockSpec((8, LANES), lambda c, i: (c, 0)),
        ),
        compiler_params=pltpu.CompilerParams(
            dimension_semantics=dims,
            vmem_limit_bytes=vmem_limit,
        ),
        cost_estimate=cost,
    )(x2d, t2d)

    # partial holds per-(sublane, lane) partial sums; scalar sum + mean here.
    return jnp.sum(partial) * (ALPHA / total_n)


def _focal_loss_ref(inputs, targets):
    p = inputs.astype(jnp.float32)
    t = targets.astype(jnp.float32)
    bce = -(t * jnp.maximum(jnp.log(p), -100.0)
            + (1.0 - t) * jnp.maximum(jnp.log(1.0 - p), -100.0))
    pt = jnp.exp(-bce)
    return jnp.mean(ALPHA * (1.0 - pt) ** GAMMA * bce)


if __name__ == "__main__":
    key = jax.random.PRNGKey(0)
    k1, k2, k3, k4 = jax.random.split(key, 4)

    # Probabilities in (0, 1) (logits=False path) and soft targets in [0, 1].
    x = jax.random.uniform(k1, (2, 4, 16, 16), jnp.float32, 1e-3, 1.0 - 1e-3)
    t = jax.random.uniform(k2, (2, 4, 16, 16), jnp.float32, 0.0, 1.0)
    loss = jax.block_until_ready(focal_loss(x, t))
    ref = jax.block_until_ready(_focal_loss_ref(x, t))
    assert jnp.allclose(loss, ref, rtol=1e-5, atol=1e-6), (loss, ref)

    # Ragged element count (2*4*17*19 = 2584, not a multiple of 128) ->
    # exercises the lane-pad + in-kernel element-mask path.
    x2 = jax.random.uniform(k3, (2, 4, 17, 19), jnp.float32, 1e-3, 1.0 - 1e-3)
    t2 = jax.random.uniform(k4, (2, 4, 17, 19), jnp.float32, 0.0, 1.0)
    loss2 = jax.block_until_ready(focal_loss(x2, t2))
    ref2 = jax.block_until_ready(_focal_loss_ref(x2, t2))
    assert jnp.allclose(loss2, ref2, rtol=1e-5, atol=1e-6), (loss2, ref2)

    # Tiny row tile -> exercises multi-step accumulation + last-tile masking.
    loss3 = jax.block_until_ready(focal_loss(x2, t2, max_row_tile=8))
    assert jnp.allclose(loss3, ref2, rtol=1e-5, atol=1e-6), (loss3, ref2)

    # bfloat16 inputs stay narrow in HBM and are widened in-register.
    loss4 = jax.block_until_ready(
        focal_loss(x.astype(jnp.bfloat16), t.astype(jnp.bfloat16)))
    ref4 = jax.block_until_ready(
        _focal_loss_ref(x.astype(jnp.bfloat16), t.astype(jnp.bfloat16)))
    assert jnp.allclose(loss4, ref4, rtol=1e-4, atol=1e-5), (loss4, ref4)

    print("KERNEL_OK")
</pallas_src>

<mosaic_0001>
module attributes {stable_mosaic.version = 11 : i64} {
  func.func @kernel(%arg0: i32, %arg1: i32, %arg2: memref<32x128xf32, #tpu.memory_space<vmem>>, %arg3: memref<32x128xf32, #tpu.memory_space<vmem>>, %arg4: memref<8x128xf32, #tpu.memory_space<vmem>>) attributes {dimension_semantics = [#tpu.dimension_semantics<arbitrary>, #tpu.dimension_semantics<arbitrary>], iteration_bounds = array<i64: 1, 1>, scalar_prefetch = 0 : i64, scratch_operands = 0 : i64, tpu.core_type = #tpu.core_type<tc>, window_params = [{transform_indices = @transform_0, window_bounds = array<i64: 32, 128>}, {transform_indices = @transform_1, window_bounds = array<i64: 32, 128>}, {transform_indices = @transform_2, window_bounds = array<i64: 8, 128>}]} {
    %c0_i32 = arith.constant 0 : i32
    %0 = arith.cmpi eq, %arg1, %c0_i32 : i32
    %1 = arith.extui %0 : i1 to i32
    %c0_i32_0 = arith.constant 0 : i32
    %2 = arith.cmpi ne, %1, %c0_i32_0 : i32
    scf.if %2 {
      %cst_16 = arith.constant 0.000000e+00 : f32
      %46 = vector.broadcast %cst_16 : f32 to vector<8x128xf32>
      %c0_17 = arith.constant 0 : index
      %c0_18 = arith.constant 0 : index
      %47 = vector.load %arg4[%c0_17, %c0_18] : memref<8x128xf32, #tpu.memory_space<vmem>>, vector<8x128xf32>
      tpu.vector_store %arg4[%c0_17, %c0_18], %46 {strides = array<i32>} : memref<8x128xf32, #tpu.memory_space<vmem>>, vector<8x128xf32>,
    } else {
    }
    %c0 = arith.constant 0 : index
    %c0_1 = arith.constant 0 : index
    %3 = vector.load %arg2[%c0, %c0_1] : memref<32x128xf32, #tpu.memory_space<vmem>>, vector<32x128xf32>
    %c0_2 = arith.constant 0 : index
    %c0_3 = arith.constant 0 : index
    %4 = vector.load %arg3[%c0_2, %c0_3] : memref<32x128xf32, #tpu.memory_space<vmem>>, vector<32x128xf32>
    %5 = math.log %3 : vector<32x128xf32>
    %cst = arith.constant -1.000000e+02 : f32
    %6 = vector.broadcast %cst : f32 to vector<32x128xf32>
    %7 = arith.maximumf %5, %6 : vector<32x128xf32>
    %cst_4 = arith.constant 1.000000e+00 : f32
    %8 = vector.broadcast %cst_4 : f32 to vector<32x128xf32>
    %9 = arith.subf %8, %3 : vector<32x128xf32>
    %10 = math.log %9 : vector<32x128xf32>
    %cst_5 = arith.constant -1.000000e+02 : f32
    %11 = vector.broadcast %cst_5 : f32 to vector<32x128xf32>
    %12 = arith.maximumf %10, %11 : vector<32x128xf32>
    %13 = arith.mulf %4, %7 : vector<32x128xf32>
    %cst_6 = arith.constant 1.000000e+00 : f32
    %14 = vector.broadcast %cst_6 : f32 to vector<32x128xf32>
    %15 = arith.subf %14, %4 : vector<32x128xf32>
    %16 = arith.mulf %15, %12 : vector<32x128xf32>
    %17 = arith.addf %13, %16 : vector<32x128xf32>
    %cst_7 = arith.constant 0.000000e+00 : f32
    %18 = vector.broadcast %cst_7 : f32 to vector<32x128xf32>
    %19 = arith.subf %18, %17 : vector<32x128xf32>
    %cst_8 = arith.constant 0.000000e+00 : f32
    %20 = vector.broadcast %cst_8 : f32 to vector<32x128xf32>
    %21 = arith.subf %20, %19 : vector<32x128xf32>
    %22 = math.exp %21 : vector<32x128xf32>
    %cst_9 = arith.constant 1.000000e+00 : f32
    %23 = vector.broadcast %cst_9 : f32 to vector<32x128xf32>
    %24 = arith.subf %23, %22 : vector<32x128xf32>
    %25 = arith.mulf %24, %24 : vector<32x128xf32>
    %26 = arith.mulf %25, %19 : vector<32x128xf32>
    %c1_i32 = arith.constant 1 : i32
    %27 = arith.muli %arg0, %c1_i32 : i32
    %28 = arith.addi %27, %arg1 : i32
    %c32_i32 = arith.constant 32 : i32
    %29 = arith.muli %28, %c32_i32 : i32
    %30 = tpu.iota {dimensions = array<i32: 0>} : vector<32x128xi32>
    %31 = tpu.iota {dimensions = array<i32: 1>} : vector<32x128xi32>
    %32 = vector.broadcast %29 : i32 to vector<32x128xi32>
    %33 = arith.addi %32, %30 : vector<32x128xi32>
    %c128_i32 = arith.constant 128 : i32
    %34 = vector.broadcast %c128_i32 : i32 to vector<32x128xi32>
    %35 = arith.muli %33, %34 : vector<32x128xi32>
    %36 = arith.addi %35, %31 : vector<32x128xi32>
    %c2048_i32 = arith.constant 2048 : i32
    %37 = vector.broadcast %c2048_i32 : i32 to vector<32x128xi32>
    %38 = arith.cmpi slt, %36, %37 : vector<32x128xi32>
    %cst_10 = arith.constant 0.000000e+00 : f32
    %39 = vector.broadcast %cst_10 : f32 to vector<32x128xf32>
    %40 = arith.select %38, %26, %39 : vector<32x128xi1>, vector<32x128xf32>
    %c0_11 = arith.constant 0 : index
    %c0_12 = arith.constant 0 : index
    %41 = vector.load %arg4[%c0_11, %c0_12] : memref<8x128xf32, #tpu.memory_space<vmem>>, vector<8x128xf32>
    %42 = vector.shape_cast %40 : vector<32x128xf32> to vector<4x8x128xf32>
    %cst_13 = arith.constant dense<0.000000e+00> : vector<8x128xf32>
    %43 = vector.multi_reduction <add>, %42, %cst_13 [0] : vector<4x8x128xf32> to vector<8x128xf32>
    %44 = arith.addf %41, %43 : vector<8x128xf32>
    %c0_14 = arith.constant 0 : index
    %c0_15 = arith.constant 0 : index
    %45 = vector.load %arg4[%c0_14, %c0_15] : memref<8x128xf32, #tpu.memory_space<vmem>>, vector<8x128xf32>
    tpu.vector_store %arg4[%c0_14, %c0_15], %44 {strides = array<i32>} : memref<8x128xf32, #tpu.memory_space<vmem>>, vector<8x128xf32>,
    return
  }
  func.func @transform_0(%arg0: i32, %arg1: i32) -> (i32, i32) {
    %c1_i32 = arith.constant 1 : i32
    %0 = arith.muli %arg0, %c1_i32 : i32
    %1 = arith.addi %0, %arg1 : i32
    %c0_i32 = arith.constant 0 : i32
    %c0_i32_0 = arith.constant 0 : i32
    return %1, %c0_i32 : i32, i32
  }
  func.func @transform_1(%arg0: i32, %arg1: i32) -> (i32, i32) {
    %c1_i32 = arith.constant 1 : i32
    %0 = arith.muli %arg0, %c1_i32 : i32
    %1 = arith.addi %0, %arg1 : i32
    %c0_i32 = arith.constant 0 : i32
    %c0_i32_0 = arith.constant 0 : i32
    return %1, %c0_i32 : i32, i32
  }
  func.func @transform_2(%arg0: i32, %arg1: i32) -> (i32, i32) {
    %c0_i32 = arith.constant 0 : i32
    %c0_i32_0 = arith.constant 0 : i32
    return %arg0, %c0_i32 : i32, i32
  }
}

</mosaic_0001>

<bundles_post_ra>
// kernel: tpu_custom_call.1
= control target key start
LH: loop header
LB: loop body
LE: loop exit
PB: predicated region body
PF: predicated region fallthrough
CT: control target
= control target key end

     0   :  { %7 = vsyncpa [#allocation3], 0  ;;  %s326_s0 = inlined_call_operand.hbm [shape: f32[16,128], index: 0, kind: input, shape index: {}]   ;;  %s327_s1 = inlined_call_operand.hbm [shape: f32[16,128], index: 1, kind: input, shape index: {}]   ;;  %s328_s2 = inlined_call_operand.hbm [shape: f32[8,128], index: 2, kind: output, shape index: {}]  }
   0x1   :  { %8 = vsyncpa [#allocation6], 0 }
   0x2   :  { %9 = vsyncpa [#allocation4], 0 }
   0x3   :  { %18 = vsyncadd [#allocation3], 256  ;;  %s297_s9 = smov [#allocation2]  }
   0x4   :  { %s23_s10 = sshll.u32 %s297_s9, 4  ;;  %s24_s10 = int_to_ptr.vmem [resolvable:$true] %s23_s10 }
   0x5   :  { %s239_s11 = scalar_lea.vmem %s24_s10, 256  ;;  %s243_s12 = scalar_lea.vmem %s24_s10, 512 }
   0x6   :  { %p240_p0 = scmp.ne.s32.totalorder %s24_s10, %s239_s11  ;;  %p244_p1 = scmp.lt.s32.totalorder %s24_s10, %s24_s10 }
   0x7   :  { %p245_p2 = scmp.lt.s32.totalorder %s243_s12, %s239_s11 }
   0x9   :  { %p246_p3 = por %p245_p2, %p244_p1 }
   0xb   :  { %p247_p4 = pnand %p246_p3, %p240_p0 }
   0xd   :  { %250 = shalt.err (!%p247_p4)
}
   0xe   :  { %s298_s13 = smov 128   ;;  %s299_s14 = smov 8  }
   0xf   :  { %29 = dma.hbm_to_vmem [thread:$0]  %s326_s0, 256, %s24_s10, [#allocation3], %s298_s13, %s298_s13, %s299_s14  }
  0x10   :  { %38 = vsyncadd [#allocation6], 256  ;;  %s300_s17 = smov [#allocation5]  }
  0x11   :  { %s43_s18 = sshll.u32 %s300_s17, 4  ;;  %s44_s18 = int_to_ptr.vmem [resolvable:$true] %s43_s18 }
  0x12   :  { %s259_s19 = scalar_lea.vmem %s44_s18, 256  ;;  %s263_s20 = scalar_lea.vmem %s44_s18, 512 }
  0x13   :  { %p260_p5 = scmp.ne.s32.totalorder %s44_s18, %s259_s19  ;;  %p264_p6 = scmp.lt.s32.totalorder %s44_s18, %s44_s18 }
  0x14   :  { %p265_p7 = scmp.lt.s32.totalorder %s263_s20, %s259_s19 }
  0x16   :  { %p266_p8 = por %p265_p7, %p264_p6 }
  0x18   :  { %p267_p9 = pnand %p266_p8, %p260_p5 }
  0x1a   :  { %270 = shalt.err (!%p267_p9)
}
  0x1b   :  { %49 = dma.hbm_to_vmem [thread:$0]  %s327_s1, 256, %s44_s18, [#allocation6], %s298_s13, %s298_s13, %s299_s14  }
  0x1c   :  { %291 = dma.done.wait [#allocation3], 512  }
  0x1d   :  { %292 = vsyncadd [#allocation3], 4294966784 }
  0x1e   :  { %293 = dma.done.wait [#allocation6], 512  }
  0x1f   :  { %294 = vsyncadd [#allocation6], 4294966784  ;;  %v69_v0 = vld [vmem:[#allocation2] sm:$0xff]  ;;  %v70_v1 = vld [vmem:[#allocation2 + $0x8] sm:$0xff]  ;;  %v151_v60 = vlaneseq  ;;  %s301_s0 = smov [#allocation7]  }
  0x20   :  { %v71_v2 = vld [vmem:[#allocation2 + $0x10] sm:$0xff]  ;;  %v72_v3 = vld [vmem:[#allocation2 + $0x18] sm:$0xff]  ;;  %207 = vlog2.f32 %v69_v0  ;;  %v89_v4 = vsub.f32 1.0, %v69_v0  ;;  %v90_v5 = vsub.f32 1.0, %v70_v1  ;;  %v73_v12 = vld [vmem:[#allocation5] sm:$0xff]  ;;  %s191_s1 = sshll.u32 %s301_s0, 4  ;;  %s192_s1 = int_to_ptr.vmem [resolvable:$true] %s191_s1 }
  0x21   :  { %209 = vlog2.f32 %v70_v1  ;;  %v91_v6 = vsub.f32 1.0, %v71_v2  ;;  %v92_v7 = vsub.f32 1.0, %v72_v3  ;;  %v74_v15 = vld [vmem:[#allocation5 + $0x8] sm:$0xff]  ;;  %v75_v19 = vld [vmem:[#allocation5 + $0x10] sm:$0xff]  ;;  %v76_v23 = vld [vmem:[#allocation5 + $0x18] sm:$0xff]  ;;  %v109_v26 = vsub.f32 1.0, %v73_v12  ;;  %p276_p11 = scmp.lt.s32.totalorder %s192_s1, %s192_s1 }
  0x22   :  { %211 = vlog2.f32 %v71_v2  ;;  %v110_v30 = vsub.f32 1.0, %v74_v15  ;;  %v111_v35 = vsub.f32 1.0, %v75_v19  ;;  %v112_v39 = vsub.f32 1.0, %v76_v23  ;;  %s271_s23 = scalar_lea.vmem %s192_s1, 128 }
  0x23   :  { %213 = vlog2.f32 %v72_v3  ;;  %v152_v1 = vshrl.u32 %v151_v60, 7  ;;  %p272_p10 = scmp.ne.s32.totalorder %s192_s1, %s271_s23  ;;  %p277_p12 = scmp.lt.s32.totalorder %s271_s23, %s271_s23 }
  0x24   :  { %215 = vlog2.f32 %v89_v4 }
  0x25   :  { %217 = vlog2.f32 %v90_v5  ;;  %v153_v2 = vadd.s32 8, %v152_v1  ;;  %v154_v3 = vadd.s32 16, %v152_v1  ;;  %v155_v4 = vadd.s32 24, %v152_v1  ;;  %p278_p13 = por %p277_p12, %p276_p11 }
  0x26   :  { %219 = vlog2.f32 %v91_v6  ;;  %v157_v5 = vand.u32 127, %v151_v60  ;;  %v163_v6 = vmul.u32 128, %v152_v1 }
  0x27   :  { %221 = vlog2.f32 %v92_v7  ;;  %v164_v7 = vmul.u32 128, %v153_v2  ;;  %p279_p0 = pnand %p278_p13, %p272_p10 }
  0x2d   :  { %v208_v8 = vpop.eup %207 }
  0x2e   :  { %v210_v9 = vpop.eup %209  ;;  %v78_v10 = vmul.f32 0.6931472, %v208_v8  ;;  %v165_v8 = vmul.u32 128, %v154_v3 }
  0x2f   :  { %v212_v11 = vpop.eup %211  ;;  %v80_v13 = vmul.f32 0.6931472, %v210_v9  ;;  %v166_v9 = vmul.u32 128, %v155_v4 }
  0x30   :  { %v214_v14 = vpop.eup %213  ;;  %v82_v16 = vmul.f32 0.6931472, %v212_v11  ;;  %v85_v17 = vmax.f32 %v78_v10, -100.0  ;;  %v167_v11 = vadd.s32 %v163_v6, %v157_v5 }
  0x31   :  { %v216_v18 = vpop.eup %215  ;;  %v84_v20 = vmul.f32 0.6931472, %v214_v14  ;;  %v86_v21 = vmax.f32 %v80_v13, -100.0  ;;  %v168_v14 = vadd.s32 %v164_v7, %v157_v5 }
  0x32   :  { %v218_v22 = vpop.eup %217  ;;  %v87_v24 = vmax.f32 %v82_v16, -100.0  ;;  %v94_v25 = vmul.f32 0.6931472, %v216_v18  ;;  %v105_v34 = vmul.f32 %v85_v17, %v73_v12  ;;  %v169_v17 = vadd.s32 %v165_v8, %v157_v5 }
  0x33   :  { %v220_v27 = vpop.eup %219  ;;  %v88_v28 = vmax.f32 %v84_v20, -100.0  ;;  %v96_v29 = vmul.f32 0.6931472, %v218_v22  ;;  %v106_v38 = vmul.f32 %v86_v21, %v74_v15  ;;  %v170_v21 = vadd.s32 %v166_v9, %v157_v5 }
  0x34   :  { %v222_v31 = vpop.eup %221  ;;  %v98_v32 = vmul.f32 0.6931472, %v220_v27  ;;  %v101_v33 = vmax.f32 %v94_v25, -100.0  ;;  %v107_v41 = vmul.f32 %v87_v24, %v75_v19  ;;  %vm171_vm0 = vcmp.lt.s32.totalorder %v167_v11, 2048 }
  0x35   :  { %v100_v36 = vmul.f32 0.6931472, %v222_v31  ;;  %v102_v37 = vmax.f32 %v96_v29, -100.0  ;;  %v108_v44 = vmul.f32 %v88_v28, %v76_v23  ;;  %vm172_vm1 = vcmp.lt.s32.totalorder %v168_v14, 2048 }
  0x36   :  { %v103_v40 = vmax.f32 %v98_v32, -100.0  ;;  %v113_v42 = vmul.f32 %v109_v26, %v101_v33  ;;  %vm173_vm2 = vcmp.lt.s32.totalorder %v169_v17, 2048  ;;  %vm174_vm3 = vcmp.lt.s32.totalorder %v170_v21, 2048 }
  0x37   :  { %v104_v43 = vmax.f32 %v100_v36, -100.0  ;;  %v114_v45 = vmul.f32 %v110_v30, %v102_v37 }
  0x38   :  { %v115_v46 = vmul.f32 %v111_v35, %v103_v40  ;;  %v117_v47 = vadd.f32 %v113_v42, %v105_v34 }
  0x39   :  { %v116_v48 = vmul.f32 %v112_v39, %v104_v43  ;;  %v118_v49 = vadd.f32 %v114_v45, %v106_v38 }
  0x3a   :  { %v119_v50 = vadd.f32 %v115_v46, %v107_v41  ;;  %v121_v51 = vsub.f32 0.0, %v117_v47 }
  0x3b   :  { %v120_v52 = vadd.f32 %v116_v48, %v108_v44  ;;  %v122_v53 = vsub.f32 0.0, %v118_v49 }
  0x3c   :  { %v123_v54 = vsub.f32 0.0, %v119_v50  ;;  %v125_v55 = vsub.f32 0.0, %v121_v51 }
  0x3d   :  { %v124_v56 = vsub.f32 0.0, %v120_v52  ;;  %v126_v57 = vsub.f32 0.0, %v122_v53 }
  0x3e   :  { %v127_v58 = vsub.f32 0.0, %v123_v54  ;;  %v129_v59 = vmul.f32 1.442695, %v125_v55 }
  0x3f   :  { %v128_v61 = vsub.f32 0.0, %v124_v56  ;;  %v131_v62 = vmul.f32 1.442695, %v126_v57 }
  0x40   :  { %223 = vpow2.f32 %v129_v59  ;;  %v133_v63 = vmul.f32 1.442695, %v127_v58 }
  0x41   :  { %225 = vpow2.f32 %v131_v62  ;;  %v135_v0 = vmul.f32 1.442695, %v128_v61 }
  0x42   :  { %227 = vpow2.f32 %v133_v63 }
  0x43   :  { %229 = vpow2.f32 %v135_v0 }
  0x4d   :  { %v224_v10 = vpop.eup %223 }
  0x4e   :  { %v226_v12 = vpop.eup %225  ;;  %v137_v13 = vsub.f32 1.0, %v224_v10 }
  0x4f   :  { %v228_v15 = vpop.eup %227  ;;  %v138_v16 = vsub.f32 1.0, %v226_v12 }
  0x50   :  { %v230_v18 = vpop.eup %229  ;;  %v139_v19 = vsub.f32 1.0, %v228_v15  ;;  %v141_v20 = vmul.f32 %v137_v13, %v137_v13 }
  0x51   :  { %v140_v22 = vsub.f32 1.0, %v230_v18  ;;  %v142_v23 = vmul.f32 %v138_v16, %v138_v16 }
  0x52   :  { %v143_v24 = vmul.f32 %v139_v19, %v139_v19  ;;  %v145_v25 = vmul.f32 %v141_v20, %v121_v51 }
  0x53   :  { %v144_v26 = vmul.f32 %v140_v22, %v140_v22  ;;  %v146_v27 = vmul.f32 %v142_v23, %v122_v53 }
  0x54   :  { %v147_v28 = vmul.f32 %v143_v24, %v123_v54  ;;  %v175_v29 = vsel %vm171_vm0, %v145_v25, 0.0 }
  0x55   :  { %v148_v30 = vmul.f32 %v144_v26, %v124_v56  ;;  %v176_v31 = vsel %vm172_vm1, %v146_v27, 0.0 }
  0x56   :  { %v177_v32 = vsel %vm173_vm2, %v147_v28, 0.0  ;;  %v180_v33 = vadd.f32 %v176_v31, %v175_v29 }
  0x57   :  { %v178_v34 = vsel %vm174_vm3, %v148_v30, 0.0 }
  0x58   :  { %v181_v35 = vadd.f32 %v180_v33, %v177_v32 }
  0x5a   :  { %v182_v36 = vadd.f32 %v181_v35, %v178_v34 }
  0x5c   :  { %184 = vst [vmem:[#allocation7] sm:$0xff] %v182_v36 }
  0x5d   :  { %282 = shalt.err (!%p279_p0)
}
  0x5e   :  { %194 = dma.vmem_to_hbm [thread:$0]  %s192_s1, 128, %s328_s2, [#allocation4]  }
  0x5f   :  { %295 = dma.done.wait [#allocation4], 128  }
  0x60   :  { %296 = vsyncadd [#allocation4], 4294967168 }
  0x61   :  { %198 = vsyncpa [#allocation3], 1 }
  0x62   :  { %199 = vsyncpa [#allocation6], 1 }
  0x63   :  { %200 = vsyncpa [#allocation4], 1 }

</bundles_post_ra>
